<compile_context>
chip_gen: v7x
topology: tpu7x:2x2x1
jax: 0.10.0
libtpu: 0.0.40
codegen_flags: <defaults>
</compile_context>

<pallas_src>
import functools
import itertools

import jax
import jax.numpy as jnp
from jax.experimental import pallas as pl
from jax.experimental.pallas import tpu as pltpu

_LANE = 128
_MAX_EDGE_TILE = 1024


def _round_up(x, m):
    return ((x + m - 1) // m) * m


# --------------------------------------------------------------------------
# Fused Pallas kernel: f_unary + f_binary in one launch.
#
# Operands (all VMEM):
#   objs_ref  : (N_OBJ_PAD, F) bf16  node features, resident across the grid
#   w_ref     : (6, F, F)      bf16  [wu1, wu2, wb1_src, wb1_dst, wb2, wb3]
#   b_ref     : (8, F)         f32   rows 0..4 = [bu1, bu2, bb1, bb2, bb3]
#   src_ref   : (TILE_E, 1)    i32   edge source ids for this tile
#   dst_ref   : (TILE_E, 1)    i32   edge target ids for this tile
# Outputs:
#   unary_ref : (N_OBJ_PAD, F) f32   one private copy per tile (no block revisit)
#   binary_ref: (TILE_E, F)    f32   sigmoid outputs, lane-dense
# --------------------------------------------------------------------------
def _fused_heads_kernel(objs_ref, w_ref, b_ref, src_ref, dst_ref,
                        unary_ref, binary_ref):
    n_obj_pad = objs_ref.shape[0]
    tile_e = src_ref.shape[0]

    objs = objs_ref[...]                                  # (N_OBJ_PAD, F) bf16
    b = b_ref[...]                                        # (8, F) f32

    # ---- f_unary: Linear -> ReLU -> Linear --------------------------------
    # Tiny (n_obj rows); recomputed per grid step so every tile writes a fully
    # valid unary block and the edge axis can stay "parallel" on megacore.
    hu = jnp.dot(objs, w_ref[0], preferred_element_type=jnp.float32) + b[0:1, :]
    hu = jnp.maximum(hu, 0.0).astype(jnp.bfloat16)
    zu = jnp.dot(hu, w_ref[1], preferred_element_type=jnp.float32) + b[1:2, :]
    unary_ref[...] = zu

    # ---- f_binary: in-kernel endpoint gather + MLP + sigmoid --------------
    # One-hot gather on the MXU: no concat_x / gathered features ever hit HBM.
    obj_iota = jax.lax.broadcasted_iota(jnp.int32, (tile_e, n_obj_pad), 1)
    oh_src = jnp.where(src_ref[...] == obj_iota, 1.0, 0.0).astype(jnp.bfloat16)
    oh_dst = jnp.where(dst_ref[...] == obj_iota, 1.0, 0.0).astype(jnp.bfloat16)
    x1 = jnp.dot(oh_src, objs, preferred_element_type=jnp.float32).astype(jnp.bfloat16)
    x2 = jnp.dot(oh_dst, objs, preferred_element_type=jnp.float32).astype(jnp.bfloat16)

    # Linear(2*width, d_hidden) with split weights, then ReLU.
    h = (jnp.dot(x1, w_ref[2], preferred_element_type=jnp.float32)
         + jnp.dot(x2, w_ref[3], preferred_element_type=jnp.float32)
         + b[2:3, :])
    h = jnp.maximum(h, 0.0).astype(jnp.bfloat16)
    # Linear(d_hidden, d_hidden) -> ReLU.
    h = jnp.dot(h, w_ref[4], preferred_element_type=jnp.float32) + b[3:4, :]
    h = jnp.maximum(h, 0.0).astype(jnp.bfloat16)
    # Linear(d_hidden, n_binary) -> Sigmoid (fp32 elementwise).
    h = jnp.dot(h, w_ref[5], preferred_element_type=jnp.float32) + b[4:5, :]
    binary_ref[...] = jax.nn.sigmoid(h)


# --------------------------------------------------------------------------
# Parameter init (torch.nn.Linear-style uniform init) and packing.
# Weights are stored as (in_features, out_features) so the kernel does x @ W.
# --------------------------------------------------------------------------
def _init_linear(key, d_in, d_out):
    kw, kb = jax.random.split(key)
    bound = 1.0 / jnp.sqrt(jnp.float32(d_in))
    w = jax.random.uniform(kw, (d_in, d_out), jnp.float32, -bound, bound)
    b = jax.random.uniform(kb, (d_out,), jnp.float32, -bound, bound)
    return w, b


def init_params(key, width, d_hidden, n_unary, n_binary):
    keys = jax.random.split(key, 5)
    uw1, ub1 = _init_linear(keys[0], width, d_hidden)        # f_unary[0]
    uw2, ub2 = _init_linear(keys[1], d_hidden, n_unary)      # f_unary[2]
    bw1, bb1 = _init_linear(keys[2], 2 * width, d_hidden)    # f_binary[0]
    bw2, bb2 = _init_linear(keys[3], d_hidden, d_hidden)     # f_binary[2]
    bw3, bb3 = _init_linear(keys[4], d_hidden, n_binary)     # f_binary[4]
    return dict(unary_w1=uw1, unary_b1=ub1, unary_w2=uw2, unary_b2=ub2,
                binary_w1=bw1, binary_b1=bb1, binary_w2=bw2, binary_b2=bb2,
                binary_w3=bw3, binary_b3=bb3)


def pack_params(params, width):
    """Zero-pad every weight to (F, F), stack, cast matmul inputs to bf16."""
    dims = [params["unary_w1"].shape, params["unary_w2"].shape,
            params["binary_w2"].shape, params["binary_w3"].shape]
    f_pad = _round_up(max([width] + [d for s in dims for d in s]), _LANE)

    def pad_w(w):
        out = jnp.zeros((f_pad, f_pad), jnp.float32)
        return out.at[:w.shape[0], :w.shape[1]].set(w)

    def pad_b(bv):
        return jnp.zeros((f_pad,), jnp.float32).at[:bv.shape[0]].set(bv)

    wb1_src = params["binary_w1"][:width]      # acts on x1 (edge source features)
    wb1_dst = params["binary_w1"][width:]      # acts on x2 (edge target features)
    w_stack = jnp.stack([
        pad_w(params["unary_w1"]), pad_w(params["unary_w2"]),
        pad_w(wb1_src), pad_w(wb1_dst),
        pad_w(params["binary_w2"]), pad_w(params["binary_w3"]),
    ]).astype(jnp.bfloat16)

    b_stack = jnp.zeros((8, f_pad), jnp.float32)
    for row, name in enumerate(["unary_b1", "unary_b2", "binary_b1",
                                "binary_b2", "binary_b3"]):
        b_stack = b_stack.at[row].set(pad_b(params[name]))
    return w_stack, b_stack


# --------------------------------------------------------------------------
# Forward pass (matches QuickReadoutNet.forward with default constructor flags)
# --------------------------------------------------------------------------
def quick_readout_forward(objs, edge_index, w_stack, b_stack, *, n_unary, n_binary):
    objs2d = objs[0] if objs.ndim == 3 else objs            # (n_obj, width)
    n_obj, width = objs2d.shape
    n_edges = edge_index.shape[1]
    f_pad = w_stack.shape[-1]

    # Padding / tiling: edge list padded to the tile boundary (no partial tiles).
    n_obj_pad = _round_up(max(n_obj, 8), 8)
    tile_e = min(_MAX_EDGE_TILE, _round_up(n_edges, 8))
    n_edges_pad = _round_up(n_edges, tile_e)
    num_tiles = n_edges_pad // tile_e

    objs_p = jnp.zeros((n_obj_pad, f_pad), jnp.bfloat16)
    objs_p = objs_p.at[:n_obj, :width].set(objs2d.astype(jnp.bfloat16))
    src = jnp.zeros((n_edges_pad, 1), jnp.int32)
    src = src.at[:n_edges, 0].set(edge_index[0].astype(jnp.int32))
    dst = jnp.zeros((n_edges_pad, 1), jnp.int32)
    dst = dst.at[:n_edges, 0].set(edge_index[1].astype(jnp.int32))

    unary_full, binary_full = pl.pallas_call(
        _fused_heads_kernel,
        grid=(num_tiles,),
        in_specs=[
            pl.BlockSpec((n_obj_pad, f_pad), lambda i: (0, 0)),       # objs (resident)
            pl.BlockSpec((6, f_pad, f_pad), lambda i: (0, 0, 0)),     # weight stack (resident)
            pl.BlockSpec((8, f_pad), lambda i: (0, 0)),               # bias stack (resident)
            pl.BlockSpec((tile_e, 1), lambda i: (i, 0)),              # edge src ids
            pl.BlockSpec((tile_e, 1), lambda i: (i, 0)),              # edge dst ids
        ],
        out_specs=(
            pl.BlockSpec((None, n_obj_pad, f_pad), lambda i: (i, 0, 0)),
            pl.BlockSpec((tile_e, f_pad), lambda i: (i, 0)),
        ),
        out_shape=(
            jax.ShapeDtypeStruct((num_tiles, n_obj_pad, f_pad), jnp.float32),
            jax.ShapeDtypeStruct((n_edges_pad, f_pad), jnp.float32),
        ),
        compiler_params=pltpu.CompilerParams(
            dimension_semantics=("parallel",),        # v7x: shard edge tiles over 2 TCs
            vmem_limit_bytes=32 * 1024 * 1024,        # explicit budget, safe on v7x 64 MiB
        ),
    )(objs_p, w_stack, b_stack, src, dst)

    pred = unary_full[0, :n_obj, :n_unary]
    pred_sigmoid = binary_full[:n_edges, :n_binary]
    return {"pred": pred,
            "current_embed": objs2d[None, :, :],
            "pred_sigmoid": pred_sigmoid}


# --------------------------------------------------------------------------
# Pure-JAX reference (fp32) for a numerical sanity check.
# --------------------------------------------------------------------------
def _reference_forward(objs, edge_index, params):
    x = objs
    hu = jnp.maximum(x @ params["unary_w1"] + params["unary_b1"], 0.0)
    pred = hu @ params["unary_w2"] + params["unary_b2"]
    cx = jnp.concatenate([x[edge_index[0]], x[edge_index[1]]], axis=-1)
    h = jnp.maximum(cx @ params["binary_w1"] + params["binary_b1"], 0.0)
    h = jnp.maximum(h @ params["binary_w2"] + params["binary_b2"], 0.0)
    y = jax.nn.sigmoid(h @ params["binary_w3"] + params["binary_b3"])
    return pred, y


# --------------------------------------------------------------------------
# Demo
# --------------------------------------------------------------------------
if __name__ == "__main__":
    n_objects = 8
    width = 32
    d_hidden = 32
    n_unary = 4
    n_binary = 6

    key = jax.random.PRNGKey(0)
    k_params, k_objs = jax.random.split(key)

    params = init_params(k_params, width, d_hidden, n_unary, n_binary)
    w_stack, b_stack = pack_params(params, width)

    # objs as the module receives them: (n_obj, width) node features.
    objs = jax.random.normal(k_objs, (n_objects, width), dtype=jnp.float32)

    # Fully-connected directed graph (all ordered pairs), edge_index: (2, n_edges)
    pairs = [(i, j) for i, j in itertools.permutations(range(n_objects), 2)]
    edge_index = jnp.asarray(pairs, dtype=jnp.int32).T
    n_edges = edge_index.shape[1]

    fwd = jax.jit(functools.partial(quick_readout_forward,
                                    n_unary=n_unary, n_binary=n_binary))
    out = fwd(objs, edge_index, w_stack, b_stack)
    jax.block_until_ready(out)

    assert out["pred"].shape == (n_objects, n_unary)
    assert out["current_embed"].shape == (1, n_objects, width)
    assert out["pred_sigmoid"].shape == (n_edges, n_binary)

    # Numerical sanity check vs. fp32 reference (kernel uses bf16 matmul inputs).
    ref_pred, ref_sig = _reference_forward(objs, edge_index, params)
    assert float(jnp.max(jnp.abs(out["pred"] - ref_pred))) < 0.1
    assert float(jnp.max(jnp.abs(out["pred_sigmoid"] - ref_sig))) < 0.05

    print("KERNEL_OK")
</pallas_src>

<mosaic_0001>
module attributes {stable_mosaic.version = 11 : i64} {
  func.func @_fused_heads_kernel(%arg0: i32, %arg1: memref<8x128xbf16, #tpu.memory_space<vmem>>, %arg2: memref<6x128x128xbf16, #tpu.memory_space<vmem>>, %arg3: memref<8x128xf32, #tpu.memory_space<vmem>>, %arg4: memref<56x1xi32, #tpu.memory_space<vmem>>, %arg5: memref<56x1xi32, #tpu.memory_space<vmem>>, %arg6: memref<1x8x128xf32, #tpu.memory_space<vmem>>, %arg7: memref<56x128xf32, #tpu.memory_space<vmem>>) attributes {dimension_semantics = [#tpu.dimension_semantics<parallel>], iteration_bounds = array<i64: 1>, scalar_prefetch = 0 : i64, scratch_operands = 0 : i64, tpu.core_type = #tpu.core_type<tc>, window_params = [{pipeline_mode = #tpu.pipeline_mode<synchronous>, transform_indices = @transform_0, window_bounds = array<i64: 8, 128>}, {pipeline_mode = #tpu.pipeline_mode<synchronous>, transform_indices = @transform_1, window_bounds = array<i64: 6, 128, 128>}, {pipeline_mode = #tpu.pipeline_mode<synchronous>, transform_indices = @transform_2, window_bounds = array<i64: 8, 128>}, {transform_indices = @transform_3, window_bounds = array<i64: 56, 1>}, {transform_indices = @transform_4, window_bounds = array<i64: 56, 1>}, {transform_indices = @transform_5, window_bounds = array<i64: 1, 8, 128>}, {transform_indices = @transform_6, window_bounds = array<i64: 56, 128>}]} {
    %c0 = arith.constant 0 : index
    %c0_0 = arith.constant 0 : index
    %0 = vector.load %arg1[%c0, %c0_0] : memref<8x128xbf16, #tpu.memory_space<vmem>>, vector<8x128xbf16>
    %c0_1 = arith.constant 0 : index
    %c0_2 = arith.constant 0 : index
    %1 = vector.load %arg3[%c0_1, %c0_2] : memref<8x128xf32, #tpu.memory_space<vmem>>, vector<8x128xf32>
    %c0_3 = arith.constant 0 : index
    %c0_4 = arith.constant 0 : index
    %c0_5 = arith.constant 0 : index
    %2 = vector.load %arg2[%c0_3, %c0_4, %c0_5] : memref<6x128x128xbf16, #tpu.memory_space<vmem>>, vector<1x128x128xbf16>
    %3 = vector.shape_cast %2 : vector<1x128x128xbf16> to vector<128x128xbf16>
    %cst = arith.constant dense<0.000000e+00> : vector<8x128xf32>
    %4 = tpu.matmul %0, %3, %cst {dimension_numbers = #tpu.dot_dimension_numbers<[1], [0], [0], [1], [0, 0, 1, 1], [], []>} : vector<8x128xbf16>, vector<128x128xbf16>, vector<8x128xf32> -> vector<8x128xf32>
    %5 = vector.extract_strided_slice %1 {offsets = [0, 0], sizes = [1, 128], strides = [1, 1]} : vector<8x128xf32> to vector<1x128xf32>
    %6 = vector.broadcast %5 : vector<1x128xf32> to vector<8x128xf32>
    %7 = arith.addf %4, %6 : vector<8x128xf32>
    %cst_6 = arith.constant 0.000000e+00 : f32
    %8 = vector.broadcast %cst_6 : f32 to vector<8x128xf32>
    %9 = arith.maximumf %7, %8 : vector<8x128xf32>
    %10 = arith.truncf %9 : vector<8x128xf32> to vector<8x128xbf16>
    %c1 = arith.constant 1 : index
    %c0_7 = arith.constant 0 : index
    %c0_8 = arith.constant 0 : index
    %11 = vector.load %arg2[%c1, %c0_7, %c0_8] : memref<6x128x128xbf16, #tpu.memory_space<vmem>>, vector<1x128x128xbf16>
    %12 = vector.shape_cast %11 : vector<1x128x128xbf16> to vector<128x128xbf16>
    %cst_9 = arith.constant dense<0.000000e+00> : vector<8x128xf32>
    %13 = tpu.matmul %10, %12, %cst_9 {dimension_numbers = #tpu.dot_dimension_numbers<[1], [0], [0], [1], [0, 0, 1, 1], [], []>} : vector<8x128xbf16>, vector<128x128xbf16>, vector<8x128xf32> -> vector<8x128xf32>
    %14 = vector.extract_strided_slice %1 {offsets = [1, 0], sizes = [1, 128], strides = [1, 1]} : vector<8x128xf32> to vector<1x128xf32>
    %15 = vector.broadcast %14 : vector<1x128xf32> to vector<8x128xf32>
    %16 = arith.addf %13, %15 : vector<8x128xf32>
    %c0_10 = arith.constant 0 : index
    %c0_11 = arith.constant 0 : index
    %c0_12 = arith.constant 0 : index
    %17 = vector.load %arg6[%c0_10, %c0_11, %c0_12] : memref<1x8x128xf32, #tpu.memory_space<vmem>>, vector<1x8x128xf32>
    %18 = vector.shape_cast %17 : vector<1x8x128xf32> to vector<8x128xf32>
    %19 = vector.shape_cast %16 : vector<8x128xf32> to vector<1x8x128xf32>
    tpu.vector_store %arg6[%c0_10, %c0_11, %c0_12], %19 {strides = array<i32>} : memref<1x8x128xf32, #tpu.memory_space<vmem>>, vector<1x8x128xf32>,
    %20 = tpu.iota {dimensions = array<i32: 1>} : vector<56x8xi32>
    %c0_13 = arith.constant 0 : index
    %c0_14 = arith.constant 0 : index
    %21 = vector.load %arg4[%c0_13, %c0_14] : memref<56x1xi32, #tpu.memory_space<vmem>>, vector<56x1xi32>
    %22 = vector.broadcast %21 : vector<56x1xi32> to vector<56x8xi32>
    %23 = arith.cmpi eq, %22, %20 : vector<56x8xi32>
    %cst_15 = arith.constant 1.000000e+00 : f32
    %cst_16 = arith.constant 0.000000e+00 : f32
    %24 = vector.broadcast %cst_15 : f32 to vector<56x8xf32>
    %25 = vector.broadcast %cst_16 : f32 to vector<56x8xf32>
    %26 = arith.select %23, %24, %25 : vector<56x8xi1>, vector<56x8xf32>
    %27 = arith.truncf %26 : vector<56x8xf32> to vector<56x8xbf16>
    %c0_17 = arith.constant 0 : index
    %c0_18 = arith.constant 0 : index
    %28 = vector.load %arg5[%c0_17, %c0_18] : memref<56x1xi32, #tpu.memory_space<vmem>>, vector<56x1xi32>
    %29 = vector.broadcast %28 : vector<56x1xi32> to vector<56x8xi32>
    %30 = arith.cmpi eq, %29, %20 : vector<56x8xi32>
    %cst_19 = arith.constant 1.000000e+00 : f32
    %cst_20 = arith.constant 0.000000e+00 : f32
    %31 = vector.broadcast %cst_19 : f32 to vector<56x8xf32>
    %32 = vector.broadcast %cst_20 : f32 to vector<56x8xf32>
    %33 = arith.select %30, %31, %32 : vector<56x8xi1>, vector<56x8xf32>
    %34 = arith.truncf %33 : vector<56x8xf32> to vector<56x8xbf16>
    %cst_21 = arith.constant dense<0.000000e+00> : vector<56x128xf32>
    %35 = tpu.matmul %27, %0, %cst_21 {dimension_numbers = #tpu.dot_dimension_numbers<[1], [0], [0], [1], [0, 0, 1, 1], [], []>} : vector<56x8xbf16>, vector<8x128xbf16>, vector<56x128xf32> -> vector<56x128xf32>
    %36 = arith.truncf %35 : vector<56x128xf32> to vector<56x128xbf16>
    %cst_22 = arith.constant dense<0.000000e+00> : vector<56x128xf32>
    %37 = tpu.matmul %34, %0, %cst_22 {dimension_numbers = #tpu.dot_dimension_numbers<[1], [0], [0], [1], [0, 0, 1, 1], [], []>} : vector<56x8xbf16>, vector<8x128xbf16>, vector<56x128xf32> -> vector<56x128xf32>
    %38 = arith.truncf %37 : vector<56x128xf32> to vector<56x128xbf16>
    %c2 = arith.constant 2 : index
    %c0_23 = arith.constant 0 : index
    %c0_24 = arith.constant 0 : index
    %39 = vector.load %arg2[%c2, %c0_23, %c0_24] : memref<6x128x128xbf16, #tpu.memory_space<vmem>>, vector<1x128x128xbf16>
    %40 = vector.shape_cast %39 : vector<1x128x128xbf16> to vector<128x128xbf16>
    %cst_25 = arith.constant dense<0.000000e+00> : vector<56x128xf32>
    %41 = tpu.matmul %36, %40, %cst_25 {dimension_numbers = #tpu.dot_dimension_numbers<[1], [0], [0], [1], [0, 0, 1, 1], [], []>} : vector<56x128xbf16>, vector<128x128xbf16>, vector<56x128xf32> -> vector<56x128xf32>
    %c3 = arith.constant 3 : index
    %c0_26 = arith.constant 0 : index
    %c0_27 = arith.constant 0 : index
    %42 = vector.load %arg2[%c3, %c0_26, %c0_27] : memref<6x128x128xbf16, #tpu.memory_space<vmem>>, vector<1x128x128xbf16>
    %43 = vector.shape_cast %42 : vector<1x128x128xbf16> to vector<128x128xbf16>
    %cst_28 = arith.constant dense<0.000000e+00> : vector<56x128xf32>
    %44 = tpu.matmul %38, %43, %cst_28 {dimension_numbers = #tpu.dot_dimension_numbers<[1], [0], [0], [1], [0, 0, 1, 1], [], []>} : vector<56x128xbf16>, vector<128x128xbf16>, vector<56x128xf32> -> vector<56x128xf32>
    %45 = arith.addf %41, %44 : vector<56x128xf32>
    %46 = vector.extract_strided_slice %1 {offsets = [2, 0], sizes = [1, 128], strides = [1, 1]} : vector<8x128xf32> to vector<1x128xf32>
    %47 = vector.broadcast %46 : vector<1x128xf32> to vector<56x128xf32>
    %48 = arith.addf %45, %47 : vector<56x128xf32>
    %cst_29 = arith.constant 0.000000e+00 : f32
    %49 = vector.broadcast %cst_29 : f32 to vector<56x128xf32>
    %50 = arith.maximumf %48, %49 : vector<56x128xf32>
    %51 = arith.truncf %50 : vector<56x128xf32> to vector<56x128xbf16>
    %c4 = arith.constant 4 : index
    %c0_30 = arith.constant 0 : index
    %c0_31 = arith.constant 0 : index
    %52 = vector.load %arg2[%c4, %c0_30, %c0_31] : memref<6x128x128xbf16, #tpu.memory_space<vmem>>, vector<1x128x128xbf16>
    %53 = vector.shape_cast %52 : vector<1x128x128xbf16> to vector<128x128xbf16>
    %cst_32 = arith.constant dense<0.000000e+00> : vector<56x128xf32>
    %54 = tpu.matmul %51, %53, %cst_32 {dimension_numbers = #tpu.dot_dimension_numbers<[1], [0], [0], [1], [0, 0, 1, 1], [], []>} : vector<56x128xbf16>, vector<128x128xbf16>, vector<56x128xf32> -> vector<56x128xf32>
    %55 = vector.extract_strided_slice %1 {offsets = [3, 0], sizes = [1, 128], strides = [1, 1]} : vector<8x128xf32> to vector<1x128xf32>
    %56 = vector.broadcast %55 : vector<1x128xf32> to vector<56x128xf32>
    %57 = arith.addf %54, %56 : vector<56x128xf32>
    %cst_33 = arith.constant 0.000000e+00 : f32
    %58 = vector.broadcast %cst_33 : f32 to vector<56x128xf32>
    %59 = arith.maximumf %57, %58 : vector<56x128xf32>
    %60 = arith.truncf %59 : vector<56x128xf32> to vector<56x128xbf16>
    %c5 = arith.constant 5 : index
    %c0_34 = arith.constant 0 : index
    %c0_35 = arith.constant 0 : index
    %61 = vector.load %arg2[%c5, %c0_34, %c0_35] : memref<6x128x128xbf16, #tpu.memory_space<vmem>>, vector<1x128x128xbf16>
    %62 = vector.shape_cast %61 : vector<1x128x128xbf16> to vector<128x128xbf16>
    %cst_36 = arith.constant dense<0.000000e+00> : vector<56x128xf32>
    %63 = tpu.matmul %60, %62, %cst_36 {dimension_numbers = #tpu.dot_dimension_numbers<[1], [0], [0], [1], [0, 0, 1, 1], [], []>} : vector<56x128xbf16>, vector<128x128xbf16>, vector<56x128xf32> -> vector<56x128xf32>
    %64 = vector.extract_strided_slice %1 {offsets = [4, 0], sizes = [1, 128], strides = [1, 1]} : vector<8x128xf32> to vector<1x128xf32>
    %65 = vector.broadcast %64 : vector<1x128xf32> to vector<56x128xf32>
    %66 = arith.addf %63, %65 : vector<56x128xf32>
    %67 = arith.negf %66 : vector<56x128xf32>
    %68 = math.exp %67 : vector<56x128xf32>
    %cst_37 = arith.constant 1.000000e+00 : f32
    %69 = vector.broadcast %cst_37 : f32 to vector<56x128xf32>
    %70 = arith.addf %69, %68 : vector<56x128xf32>
    %71 = arith.divf %69, %70 : vector<56x128xf32>
    %c0_38 = arith.constant 0 : index
    %c0_39 = arith.constant 0 : index
    %72 = vector.load %arg7[%c0_38, %c0_39] : memref<56x128xf32, #tpu.memory_space<vmem>>, vector<56x128xf32>
    tpu.vector_store %arg7[%c0_38, %c0_39], %71 {strides = array<i32>} : memref<56x128xf32, #tpu.memory_space<vmem>>, vector<56x128xf32>,
    return
  }
  func.func @transform_0(%arg0: i32) -> (i32, i32) {
    %c0_i32 = arith.constant 0 : i32
    %c0_i32_0 = arith.constant 0 : i32
    %c0_i32_1 = arith.constant 0 : i32
    return %c0_i32, %c0_i32_0 : i32, i32
  }
  func.func @transform_1(%arg0: i32) -> (i32, i32, i32) {
    %c0_i32 = arith.constant 0 : i32
    %c0_i32_0 = arith.constant 0 : i32
    %c0_i32_1 = arith.constant 0 : i32
    %c0_i32_2 = arith.constant 0 : i32
    return %c0_i32, %c0_i32_0, %c0_i32_1 : i32, i32, i32
  }
  func.func @transform_2(%arg0: i32) -> (i32, i32) {
    %c0_i32 = arith.constant 0 : i32
    %c0_i32_0 = arith.constant 0 : i32
    %c0_i32_1 = arith.constant 0 : i32
    return %c0_i32, %c0_i32_0 : i32, i32
  }
  func.func @transform_3(%arg0: i32) -> (i32, i32) {
    %c0_i32 = arith.constant 0 : i32
    %c0_i32_0 = arith.constant 0 : i32
    return %arg0, %c0_i32 : i32, i32
  }
  func.func @transform_4(%arg0: i32) -> (i32, i32) {
    %c0_i32 = arith.constant 0 : i32
    %c0_i32_0 = arith.constant 0 : i32
    return %arg0, %c0_i32 : i32, i32
  }
  func.func @transform_5(%arg0: i32) -> (i32, i32, i32) {
    %c0_i32 = arith.constant 0 : i32
    %c0_i32_0 = arith.constant 0 : i32
    %c0_i32_1 = arith.constant 0 : i32
    return %arg0, %c0_i32, %c0_i32_0 : i32, i32, i32
  }
  func.func @transform_6(%arg0: i32) -> (i32, i32) {
    %c0_i32 = arith.constant 0 : i32
    %c0_i32_0 = arith.constant 0 : i32
    return %arg0, %c0_i32 : i32, i32
  }
}

</mosaic_0001>

<bundles_post_ra>
// kernel: quick_readout_forward.1
= control target key start
LH: loop header
LB: loop body
LE: loop exit
PB: predicated region body
PF: predicated region fallthrough
CT: control target
= control target key end

     0   :  { %12 = vsyncpa [#allocation3], 0  ;;  %s1542_s21 = smov [#allocation2]   ;;  %s1769_s0 = inlined_call_operand.vmem [shape: bf16[8,128], index: 0, kind: input, shape index: {}]   ;;  %s1770_s1 = inlined_call_operand.hbm [shape: bf16[6,128,128], index: 1, kind: input, shape index: {}]   ;;  %s1771_s2 = inlined_call_operand.vmem [shape: f32[8,128], index: 2, kind: input, shape index: {}]   ;;  %s1772_s3 = inlined_call_operand.vmem [shape: s32[56,1], index: 3, kind: input, shape index: {}]   ;;  %s1773_s4 = inlined_call_operand.vmem [shape: s32[56,1], index: 4, kind: input, shape index: {}]   ;;  %s1774_s5 = inlined_call_operand.vmem [shape: f32[1,8,128], index: 5, kind: output, shape index: {0}]   ;;  %s1775_s6 = inlined_call_operand.vmem [shape: f32[56,128], index: 6, kind: output, shape index: {1}]  }
   0x1   :  { %s20_s22 = sshll.u32 %s1542_s21, 4  ;;  %s1518_s25 = scalar_lea.hbm %s1770_s1, 6144  ;;  %s21_s22 = int_to_ptr.vmem [resolvable:$true] %s20_s22 }
   0x2   :  { %p1519_p0 = scmp.ne.s32.totalorder %s1770_s1, %s1518_s25  ;;  %p1522_p1 = scmp.lt.u32.totalorder %s1518_s25, %s1770_s1 }
   0x4   :  { %p1524_p2 = pnand %p1522_p1, %p1519_p0 }
   0x6   :  { %1527 = shalt.err (!%p1524_p2)
}
   0x7   :  { %s1528_s30 = scalar_lea.vmem %s21_s22, 6144  ;;  %p1533_p4 = scmp.lt.s32.totalorder %s21_s22, %s21_s22 }
   0x8   :  { %p1529_p3 = scmp.ne.s32.totalorder %s21_s22, %s1528_s30  ;;  %p1534_p5 = scmp.lt.s32.totalorder %s1528_s30, %s1528_s30 }
   0xa   :  { %p1535_p6 = por %p1534_p5, %p1533_p4 }
   0xc   :  { %p1536_p7 = pnand %p1535_p6, %p1529_p3 }
   0xe   :  { %1539 = shalt.err (!%p1536_p7)
}
   0xf   :  { %s1543_s7 = smov 64   ;;  %s1544_s8 = smov 4  }
  0x10   :  { %26 = dma.hbm_to_vmem [thread:$0]  %s1770_s1, 6144, %s21_s22, [#allocation3], %s1543_s7, %s1543_s7, %s1544_s8  }
  0x11   :  { %1540 = dma.done.wait [#allocation3], 6144  }
  0x12   :  { %1541 = vsyncadd [#allocation3], 4294961152  ;;  %v1545_v0 = vmov 0.0   ;;  %vm1546_vm0 = vmmov 0   ;;  %v1547_v1 = vmov 0   ;;  %v1442_v2 = vld [vmem:[#allocation2] sm:$0xff]   ;;  %v55_v34 = vlaneseq }
  0x13   :  { %1272 = vmatprep.subr.bf16.mxu0 %v1545_v0  ;;  %1288 = vmatprep.mubr.msk.bf16.mxu0 %vm1546_vm0, %v1545_v0  ;;  %v1443_v3 = vld [vmem:[#allocation2 + $0x8] sm:$0xff]   ;;  %v1444_v4 = vld [vmem:[#allocation2 + $0x10] sm:$0xff]   ;;  %v307_v5 = vld [vmem:[%s1773_s4] sm:$0xff]  ;;  %vm366_vm1 = vcmask 1043456   ;;  %vm353_vm12 = vcmask 64512  }
  0x14   :  { %1440 = vset.pattern.permute.xlu0 %v1547_v1  ;;  %1441 = vset.pattern.permute.xlu1 %v1547_v1  ;;  %v309_v6 = vld [vmem:[%s1773_s4 + $0x10] sm:$0xff]  ;;  %v1445_v7 = vld [vmem:[#allocation2 + $0x18] sm:$0xff]   ;;  %v308_v8 = vld [vmem:[%s1773_s4 + $0x8] sm:$0xff]  ;;  %v1662_v35 = vand.u32 127, %v55_v34 }
  0x15   :  { %1292 = vmatprep.subr.bf16.mxu1 %v1545_v0  ;;  %1308 = vmatprep.mubr.msk.bf16.mxu1 %vm1546_vm0, %v1545_v0  ;;  %v310_v9 = vld [vmem:[%s1773_s4 + $0x18] sm:$0xff]  ;;  %v1446_v10 = vld [vmem:[#allocation2 + $0x20] sm:$0xff]   ;;  %v312_v12 = vld [vmem:[%s1773_s4 + $0x28] sm:$0xff] }
  0x16   :  { %1273 = vmatpush3.bf16.msra.mxu0 %v1442_v2  ;;  %315 = vperm.xlu0 %1440, %v307_v5   ;;  %v311_v11 = vld [vmem:[%s1773_s4 + $0x20] sm:$0xff]  ;;  %v1451_v14 = vld [vmem:[#allocation2 + $0x48] sm:$0xff]   ;;  %v313_v16 = vld [vmem:[%s1773_s4 + $0x30] sm:$0xff] }
  0x17   :  { %1274 = vmatprep.subr.bf16.mxu0 %v1545_v0  ;;  %321 = vperm.xlu1 %1441, %v309_v6   ;;  %v1450_v13 = vld [vmem:[#allocation2 + $0x40] sm:$0xff]   ;;  %v1447_v15 = vld [vmem:[#allocation2 + $0x28] sm:$0xff]   ;;  %v1452_v18 = vld [vmem:[#allocation2 + $0x50] sm:$0xff]  }
  0x18   :  { %1293 = vmatpush3.bf16.msra.mxu1 %v1450_v13  ;;  %v261_v17 = vld [vmem:[%s1772_s3] sm:$0xff]  ;;  %v1448_v19 = vld [vmem:[#allocation2 + $0x30] sm:$0xff]   ;;  %v262_v20 = vld [vmem:[%s1772_s3 + $0x8] sm:$0xff] }
  0x19   :  { %1294 = vmatprep.subr.bf16.mxu1 %v1545_v0  ;;  %v263_v21 = vld [vmem:[%s1772_s3 + $0x10] sm:$0xff]  ;;  %v1453_v22 = vld [vmem:[#allocation2 + $0x58] sm:$0xff]   ;;  %v265_v25 = vld [vmem:[%s1772_s3 + $0x20] sm:$0xff] }
  0x1a   :  { %1275 = vmatpush3.bf16.msra.mxu0 %v1443_v3  ;;  %318 = vperm.xlu0 %1440, %v308_v8   ;;  %v1449_v23 = vld [vmem:[#allocation2 + $0x38] sm:$0xff]   ;;  %v1454_v26 = vld [vmem:[#allocation2 + $0x60] sm:$0xff]   ;;  %v266_v28 = vld [vmem:[%s1772_s3 + $0x28] sm:$0xff] }
  0x1b   :  { %1276 = vmatprep.subr.bf16.mxu0 %v1545_v0  ;;  %324 = vperm.xlu1 %1441, %v310_v9   ;;  %v264_v24 = vld [vmem:[%s1772_s3 + $0x18] sm:$0xff]  ;;  %v37_v27 = vld [vmem:[%s1769_s0] sm:$0xf]  ;;  %v267_v29 = vld [vmem:[%s1772_s3 + $0x30] sm:$0xff] }
  0x1c   :  { %1295 = vmatpush3.bf16.msra.mxu1 %v1451_v14  ;;  %v1455_v30 = vld [vmem:[#allocation2 + $0x68] sm:$0xff]   ;;  %v1656_v31 = vsel %vm366_vm1, %v37_v27, 0  ;;  %v1456_v32 = vld [vmem:[#allocation2 + $0x70] sm:$0xff]   ;;  %v1457_v33 = vld [vmem:[#allocation2 + $0x78] sm:$0xff]  }
  0x1d   :  { %1296 = vmatprep.subr.bf16.mxu1 %v1545_v0  ;;  %v1458_v38 = vld [vmem:[#allocation2 + $0xc0] sm:$0xff]   ;;  %v1459_v1 = vld [vmem:[#allocation2 + $0xc8] sm:$0xff]   ;;  %v1460_v8 = vld [vmem:[#allocation2 + $0xd0] sm:$0xff]  }
  0x1e   :  { %1277 = vmatpush3.bf16.msra.mxu0 %v1444_v4  ;;  %327 = vperm.xlu0 %1440, %v311_v11   ;;  %v1714_v11 = vshrl.u32 %v55_v34, 7  ;;  %v1720_v13 = vld [vmem:[%s1771_s2] sm:$0xff] }
  0x1f   :  { %1278 = vmatprep.subr.bf16.mxu0 %v1545_v0  ;;  %330 = vperm.xlu1 %1441, %v312_v12  }
  0x20   :  { %1297 = vmatpush3.bf16.msra.mxu1 %v1452_v18  ;;  %v57_v12 = vsub.s32 0, %v1714_v11  ;;  %v1462_v18 = vld [vmem:[#allocation2 + $0xe0] sm:$0xff]  }
  0x21   :  { %1298 = vmatprep.subr.bf16.mxu1 %v1545_v0 }
  0x22   :  { %1279 = vmatpush3.bf16.msra.mxu0 %v1445_v7  ;;  %333 = vperm.xlu0 %1440, %v313_v16   ;;  %v58_v14 = vrot.slane %v1720_v13, %v57_v12  ;;  %v1482_v12 = vld [vmem:[#allocation2 + $0x140] sm:$0xff]  }
  0x23   :  { %1280 = vmatprep.subr.bf16.mxu0 %v1545_v0  ;;  %269 = vperm.xlu1 %1441, %v261_v17  }
  0x24   :  { %1299 = vmatpush3.bf16.msra.mxu1 %v1453_v22 }
  0x25   :  { %1300 = vmatprep.subr.bf16.mxu1 %v1545_v0 }
  0x26   :  { %1281 = vmatpush3.bf16.msra.mxu0 %v1446_v10  ;;  %272 = vperm.xlu0 %1440, %v262_v20   ;;  %v1461_v10 = vld [vmem:[#allocation2 + $0xd8] sm:$0xff]  }
  0x27   :  { %1282 = vmatprep.subr.bf16.mxu0 %v1545_v0  ;;  %275 = vperm.xlu1 %1441, %v263_v21  }
  0x28   :  { %1301 = vmatpush3.bf16.msra.mxu1 %v1454_v26  ;;  %v1464_v26 = vld [vmem:[#allocation2 + $0xf0] sm:$0xff]  }
  0x29   :  { %1302 = vmatprep.subr.bf16.mxu1 %v1545_v0 }
  0x2a   :  { %1283 = vmatpush3.bf16.msra.mxu0 %v1447_v15  ;;  %278 = vperm.xlu0 %1440, %v264_v24  }
  0x2b   :  { %1284 = vmatprep.subr.bf16.mxu0 %v1545_v0  ;;  %281 = vperm.xlu1 %1441, %v265_v25   ;;  %v1463_v25 = vld [vmem:[#allocation2 + $0xe8] sm:$0xff]  }
  0x2c   :  { %1303 = vmatpush3.bf16.msra.mxu1 %v1455_v30 }
  0x2d   :  { %1304 = vmatprep.subr.bf16.mxu1 %v1545_v0 }
  0x2e   :  { %1285 = vmatpush3.bf16.msra.mxu0 %v1448_v19  ;;  %284 = vperm.xlu0 %1440, %v266_v28   ;;  %v1466_v28 = vld [vmem:[#allocation2 + $0x80] sm:$0xff]  }
  0x2f   :  { %1286 = vmatprep.subr.bf16.mxu0 %v1545_v0  ;;  %287 = vperm.xlu1 %1441, %v267_v29  }
  0x30   :  { %1305 = vmatpush3.bf16.msra.mxu1 %v1456_v32 }
  0x31   :  { %1306 = vmatprep.subr.bf16.mxu1 %v1545_v0 }
  0x32   :  { %1287 = vmatpush3.bf16.msra.mxu0 %v1449_v23 }
  0x33   :  { %1432 = vmatprep.subr.msk.bf16.mxu0 %vm366_vm1, %v37_v27 }
  0x34   :  { %1307 = vmatpush3.bf16.msra.mxu1 %v1457_v33 }
  0x35   :  { %1289 = vmatmul.mubr.bf16.vlgmr.msra.gmra.mrb[0].mxu0 %v37_v27  ;;  %1433 = vmatprep.subr.msk.bf16.mxu1 %vm366_vm1, %v37_v27  ;;  %v1465_v27 = vld [vmem:[#allocation2 + $0xf8] sm:$0xff]  }
  0x36   :  { %1313 = vmatpush3.bf16.msra.mxu0 %v1656_v31 }
  0x37   :  { %1332 = vmatprep.subr.bf16.mxu0 %v1458_v38 }
  0x95   :  { %v316_v36 = vpop.permute.xlu0 %315 }
  0x96   :  { %v322_v37 = vpop.permute.xlu1 %321  ;;  %vm335_vm2 = vcmp.eq.s32.totalorder %v316_v36, %v1662_v35 }
  0x97   :  { %vm337_vm3 = vcmp.eq.s32.totalorder %v322_v37, %v1662_v35  ;;  %v1667_v39 = vsel %vm335_vm2, 1.0, %v1545_v0 }
  0x98   :  { %v1670_v40 = vsel %vm337_vm3, 1.0, %v1545_v0 }
  0x99   :  { %v319_v41 = vpop.permute.xlu0 %318 }
  0x9a   :  { %v325_v42 = vpop.permute.xlu1 %324  ;;  %vm336_vm4 = vcmp.eq.s32.totalorder %v319_v41, %v1662_v35 }
  0x9b   :  { %vm338_vm5 = vcmp.eq.s32.totalorder %v325_v42, %v1662_v35  ;;  %v1675_v43 = vsel %vm336_vm4, 1.0, %v1545_v0 }
  0x9c   :  { %v1678_v44 = vsel %vm338_vm5, 1.0, %v1545_v0  ;;  %v349_v45 = vpack.c.bf16 %v1675_v43, %v1667_v39  ;;  %v168_v39 = vsub.s32 1, %v1714_v11 }
  0x9d   :  { %v350_v46 = vpack.c.bf16 %v1678_v44, %v1670_v40  ;;  %v328_v47 = vpop.permute.xlu0 %327 }
  0x9e   :  { %v331_v48 = vpop.permute.xlu1 %330  ;;  %vm339_vm6 = vcmp.eq.s32.totalorder %v328_v47, %v1662_v35  ;;  %v169_v40 = vrot.slane %v1720_v13, %v168_v39 }
  0x9f   :  { %vm340_vm7 = vcmp.eq.s32.totalorder %v331_v48, %v1662_v35  ;;  %v1687_v49 = vsel %vm339_vm6, 1.0, %v1545_v0 }
  0xa0   :  { %v1690_v50 = vsel %vm340_vm7, 1.0, %v1545_v0 }
  0xa1   :  { %v351_v51 = vpack.c.bf16 %v1690_v50, %v1687_v49  ;;  %v334_v52 = vpop.permute.xlu0 %333 }
  0xa2   :  { %v270_v53 = vpop.permute.xlu1 %269  ;;  %vm341_vm8 = vcmp.eq.s32.totalorder %v334_v52, %v1662_v35  ;;  %v1467_v52 = vld [vmem:[#allocation2 + $0x88] sm:$0xff]  }
  0xa3   :  { %vm289_vm9 = vcmp.eq.s32.totalorder %v270_v53, %v1662_v35  ;;  %v348_v23 = vsel %vm341_vm8, 1.0, %v1545_v0 }
  0xa4   :  { %v296_v55 = vsel %vm289_vm9, 1.0, %v1545_v0  ;;  %v352_v24 = vpack.c.bf16 %v348_v23, %v348_v23 }
  0xa5   :  { %v273_v54 = vpop.permute.xlu0 %272 }
  0xa6   :  { %v276_v56 = vpop.permute.xlu1 %275  ;;  %vm290_vm10 = vcmp.eq.s32.totalorder %v273_v54, %v1662_v35 }
  0xa7   :  { %vm291_vm11 = vcmp.eq.s32.totalorder %v276_v56, %v1662_v35  ;;  %v297_v57 = vsel %vm290_vm10, 1.0, %v1545_v0 }
  0xa8   :  { %v303_v58 = vpack.c.bf16 %v297_v57, %v296_v55  ;;  %v298_v60 = vsel %vm291_vm11, 1.0, %v1545_v0  ;;  %v1468_v55 = vld [vmem:[#allocation2 + $0x90] sm:$0xff]  }
  0xa9   :  { %v279_v59 = vpop.permute.xlu0 %278 }
  0xaa   :  { %v282_v61 = vpop.permute.xlu1 %281  ;;  %vm292_vm13 = vcmp.eq.s32.totalorder %v279_v59, %v1662_v35  ;;  %1314 = vmatprep.mubr.msk.bf16.mxu0 %vm353_vm12, %v303_v58 }
  0xab   :  { %vm293_vm14 = vcmp.eq.s32.totalorder %v282_v61, %v1662_v35  ;;  %v299_v62 = vsel %vm292_vm13, 1.0, %v1545_v0  ;;  %v1470_v61 = vld [vmem:[#allocation2 + $0xa0] sm:$0xff]  }
  0xac   :  { %v304_v63 = vpack.c.bf16 %v299_v62, %v298_v60  ;;  %v300_v2 = vsel %vm293_vm14, 1.0, %v1545_v0  ;;  %v1469_v60 = vld [vmem:[#allocation2 + $0x98] sm:$0xff]   ;;  %v1471_v62 = vld [vmem:[#allocation2 + $0xa8] sm:$0xff]  }
  0xad   :  { %v285_v3 = vpop.permute.xlu0 %284 }
  0xae   :  { %1315 = vmatmul.mubr.msk.bf16.vlgmr.msra.gmra.mrb[4].mxu0 %vm353_vm12, %v304_v63  ;;  %vm294_vm15 = vcmp.eq.s32.totalorder %v285_v3, %v1662_v35  ;;  %v288_v4 = vpop.permute.xlu1 %287  ;;  %v1472_v63 = vld [vmem:[#allocation2 + $0xb0] sm:$0xff]   ;;  %v1474_v3 = vld [vmem:[#allocation2 + $0x100] sm:$0xff]  }
  0xaf   :  { %v301_v5 = vsel %vm294_vm15, 1.0, %v1545_v0  ;;  %vm295_vm0 = vcmp.eq.s32.totalorder %v288_v4, %v1662_v35  ;;  %1333 = vmatpush3.bf16.msra.mxu0 %v1458_v38  ;;  %v1475_v4 = vld [vmem:[#allocation2 + $0x108] sm:$0xff]  }
  0xb0   :  { %v305_v6 = vpack.c.bf16 %v301_v5, %v300_v2  ;;  %v302_v7 = vsel %vm295_vm0, 1.0, %v1545_v0  ;;  %1334 = vmatprep.subr.bf16.mxu0 %v1459_v1  ;;  %v1476_v5 = vld [vmem:[#allocation2 + $0x110] sm:$0xff]  }
  0xb1   :  { %v306_v9 = vpack.c.bf16 %v302_v7, %v302_v7  ;;  %v1478_v7 = vld [vmem:[#allocation2 + $0x120] sm:$0xff]  }
  0xb2   :  { %1318 = vmatprep.mubr.msk.bf16.mxu0 %vm353_vm12, %v305_v6  ;;  %v1477_v6 = vld [vmem:[#allocation2 + $0x118] sm:$0xff]  }
  0xb3   :  { %1335 = vmatpush3.bf16.msra.mxu0 %v1459_v1  ;;  %v1473_v1 = vld [vmem:[#allocation2 + $0xb8] sm:$0xff]  }
  0xb4   :  { %1336 = vmatprep.subr.bf16.mxu0 %v1460_v8 }
  0xb6   :  { %1319 = vmatmul.mubr.msk.bf16.gmra.mrb[8].mxu0 %vm353_vm12, %v306_v9  ;;  %v1480_v9 = vld [vmem:[#allocation2 + $0x130] sm:$0xff]  }
  0xb7   :  { %1337 = vmatpush3.bf16.msra.mxu0 %v1460_v8  ;;  %v1479_v8 = vld [vmem:[#allocation2 + $0x128] sm:$0xff]  }
  0xb8   :  { %1338 = vmatprep.subr.bf16.mxu0 %v1461_v10 }
  0xbb   :  { %1339 = vmatpush3.bf16.msra.mxu0 %v1461_v10  ;;  %v1481_v10 = vld [vmem:[#allocation2 + $0x138] sm:$0xff]  }
  0xbc   :  { %1340 = vmatprep.subr.bf16.mxu0 %v1462_v18 }
  0xbf   :  { %1341 = vmatpush3.bf16.msra.mxu0 %v1462_v18  ;;  %v778_v18 = vsub.s32 2, %v1714_v11 }
  0xc0   :  { %1342 = vmatprep.subr.bf16.mxu0 %v1463_v25 }
  0xc3   :  { %1343 = vmatpush3.bf16.msra.mxu0 %v1463_v25 }
  0xc4   :  { %1344 = vmatprep.subr.bf16.mxu0 %v1464_v26 }
  0xc7   :  { %1345 = vmatpush3.bf16.msra.mxu0 %v1464_v26 }
  0xc8   :  { %1346 = vmatprep.subr.bf16.mxu0 %v1465_v27 }
  0xcb   :  { %1347 = vmatpush3.bf16.msra.mxu0 %v1465_v27 }
  0xcc   :  { %1356 = vmatprep.subr.bf16.mxu0 %v1466_v28 }
 0x108   :  { %v141_v15 = vpop.f32.mrb[0].mxu0 }
 0x109   :  { %v142_v16 = vadd.f32 %v141_v15, %v58_v14  ;;  %v1290_v17 = vpop.f32.mrb[1].mxu0 }
 0x10a   :  { %v144_v19 = vpop.f32.mrb[2].mxu0 }
 0x10b   :  { %v147_v20 = vmax.f32 %v142_v16, 0.0  ;;  %v1291_v21 = vpop.f32.mrb[3].mxu0  ;;  %v779_v19 = vrot.slane %v1720_v13, %v778_v18 }
 0x10d   :  { %v148_v22 = vpack.c.bf16 %v147_v20, %v147_v20 }
 0x10f   :  { %1309 = vmatmul.mubr.bf16.vlgmr.msra.gmra.mrb[0].mxu1 %v148_v22 }
 0x110   :  { %1323 = vmatpush3.bf16.msra.mxu1 %v1656_v31  ;;  %1324 = vmatprep.mubr.msk.bf16.mxu1 %vm353_vm12, %v349_v45 }
 0x111   :  { %1380 = vmatprep.subr.bf16.mxu1 %v1474_v3 }
 0x117   :  { %1325 = vmatmul.mubr.msk.bf16.vlgmr.msra.gmra.mrb[4].mxu1 %vm353_vm12, %v350_v46 }
 0x118   :  { %1328 = vmatprep.mubr.msk.bf16.mxu1 %vm353_vm12, %v351_v51  ;;  %1381 = vmatpush3.bf16.msra.mxu1 %v1474_v3 }
 0x119   :  { %1382 = vmatprep.subr.bf16.mxu1 %v1475_v4 }
 0x11c   :  { %1383 = vmatpush3.bf16.msra.mxu1 %v1475_v4 }
 0x11d   :  { %1384 = vmatprep.subr.bf16.mxu1 %v1476_v5 }
 0x11f   :  { %1329 = vmatmul.mubr.msk.bf16.gmra.mrb[8].mxu1 %vm353_vm12, %v352_v24 }
 0x120   :  { %1385 = vmatpush3.bf16.msra.mxu1 %v1476_v5 }
 0x121   :  { %1386 = vmatprep.subr.bf16.mxu1 %v1477_v6 }
 0x124   :  { %1387 = vmatpush3.bf16.msra.mxu1 %v1477_v6 }
 0x125   :  { %1388 = vmatprep.subr.bf16.mxu1 %v1478_v7 }
 0x128   :  { %1389 = vmatpush3.bf16.msra.mxu1 %v1478_v7 }
 0x129   :  { %1390 = vmatprep.subr.bf16.mxu1 %v1479_v8 }
 0x12c   :  { %1391 = vmatpush3.bf16.msra.mxu1 %v1479_v8 }
 0x12d   :  { %1392 = vmatprep.subr.bf16.mxu1 %v1480_v9 }
 0x130   :  { %1393 = vmatpush3.bf16.msra.mxu1 %v1480_v9 }
 0x131   :  { %1394 = vmatprep.subr.bf16.mxu1 %v1481_v10 }
 0x134   :  { %1395 = vmatpush3.bf16.msra.mxu1 %v1481_v10 }
 0x135   :  { %1404 = vmatprep.subr.bf16.mxu1 %v1482_v12 }
 0x181   :  { %v1316_v29 = vpop.f32.mrb[4].mxu0 }
 0x182   :  { %v404_v30 = vpop.f32.mrb[5].mxu0 }
 0x183   :  { %v1317_v31 = vpop.f32.mrb[6].mxu0 }
 0x184   :  { %v435_v32 = vpack.c.bf16 %v1317_v31, %v1316_v29  ;;  %v407_v33 = vpop.f32.mrb[7].mxu0 }
 0x185   :  { %v434_v0 = vpack.c.bf16 %v407_v33, %v404_v30 }
 0x189   :  { %v1320_v34 = vpop.f32.mrb[8].mxu0 }
 0x18a   :  { %v420_v35 = vpop.f32.mrb[9].mxu0  ;;  %v437_v2 = vpack.c.bf16 %v1320_v34, %v1320_v34 }
 0x18b   :  { %v1321_v36 = vpop.f32.mrb[10].mxu0 }
 0x18c   :  { %v423_v37 = vpop.f32.mrb[11].mxu0  ;;  %v1483_v36 = vld [vmem:[#allocation2 + $0x148] sm:$0xff]  }
 0x18d   :  { %v436_v38 = vpack.c.bf16 %v423_v37, %v420_v35 }
 0x1e2   :  { %v252_v41 = vpop.f32.mrb[0].mxu1 }
 0x1e3   :  { %v253_v42 = vadd.f32 %v252_v41, %v169_v40  ;;  %v1310_v43 = vpop.f32.mrb[1].mxu1 }
 0x1e4   :  { %v255_v44 = vpop.f32.mrb[2].mxu1  ;;  %v1484_v43 = vld [vmem:[#allocation2 + $0x150] sm:$0xff]  }
 0x1e5   :  { %258 = vst [vmem:[%s1774_s5] sm:$0xff] %v253_v42  ;;  %v1311_v45 = vpop.f32.mrb[3].mxu1 }
 0x1ea   :  { %v1326_v46 = vpop.f32.mrb[4].mxu1 }
 0x1eb   :  { %v484_v47 = vpop.f32.mrb[5].mxu1 }
 0x1ec   :  { %v1327_v48 = vpop.f32.mrb[6].mxu1 }
 0x1ed   :  { %v515_v49 = vpack.c.bf16 %v1327_v48, %v1326_v46  ;;  %v487_v50 = vpop.f32.mrb[7].mxu1  ;;  %v1485_v48 = vld [vmem:[#allocation2 + $0x158] sm:$0xff]  }
 0x1ee   :  { %v514_v51 = vpack.c.bf16 %v487_v50, %v484_v47 }
 0x1f0   :  { %1348 = vmatprep.mubr.bf16.mxu0 %v514_v51  ;;  %v1486_v51 = vld [vmem:[#allocation2 + $0x160] sm:$0xff]  }
 0x1f1   :  { %1349 = vmatmul.mubr.bf16.vlgmr.msra.gmra.mrb[12].mxu0 %v515_v49 }
 0x1f2   :  { %1357 = vmatpush3.bf16.msra.mxu0 %v1466_v28  ;;  %v1330_v53 = vpop.f32.mrb[8].mxu1 }
 0x1f3   :  { %v500_v54 = vpop.f32.mrb[9].mxu1  ;;  %1358 = vmatprep.subr.bf16.mxu0 %v1467_v52  ;;  %v517_v59 = vpack.c.bf16 %v1330_v53, %v1330_v53  ;;  %v1488_v53 = vld [vmem:[#allocation2 + $0x170] sm:$0xff]  }
 0x1f4   :  { %v1331_v56 = vpop.f32.mrb[10].mxu1 }
 0x1f5   :  { %v503_v57 = vpop.f32.mrb[11].mxu1 }
 0x1f6   :  { %v516_v58 = vpack.c.bf16 %v503_v57, %v500_v54  ;;  %1359 = vmatpush3.bf16.msra.mxu0 %v1467_v52  ;;  %v1487_v52 = vld [vmem:[#allocation2 + $0x168] sm:$0xff]   ;;  %v1489_v54 = vld [vmem:[#allocation2 + $0x178] sm:$0xff]  }
 0x1f7   :  { %1360 = vmatprep.subr.bf16.mxu0 %v1468_v55 }
 0x1f8   :  { %1352 = vmatprep.mubr.bf16.mxu0 %v516_v58 }
 0x1f9   :  { %1353 = vmatmul.mubr.bf16.gmra.mrb[16].mxu0 %v517_v59 }
 0x1fa   :  { %1361 = vmatpush3.bf16.msra.mxu0 %v1468_v55  ;;  %1372 = vmatprep.mubr.bf16.mxu0 %v434_v0  ;;  %v817_v55 = vsub.s32 3, %v1714_v11 }
 0x1fb   :  { %1362 = vmatprep.subr.bf16.mxu0 %v1469_v60 }
 0x1fc   :  { %v818_v56 = vrot.slane %v1720_v13, %v817_v55 }
 0x1fe   :  { %1363 = vmatpush3.bf16.msra.mxu0 %v1469_v60 }
 0x1ff   :  { %1364 = vmatprep.subr.bf16.mxu0 %v1470_v61 }
 0x202   :  { %1365 = vmatpush3.bf16.msra.mxu0 %v1470_v61 }
 0x203   :  { %1366 = vmatprep.subr.bf16.mxu0 %v1471_v62 }
 0x206   :  { %1367 = vmatpush3.bf16.msra.mxu0 %v1471_v62 }
 0x207   :  { %1368 = vmatprep.subr.bf16.mxu0 %v1472_v63 }
 0x20a   :  { %1369 = vmatpush3.bf16.msra.mxu0 %v1472_v63 }
 0x20b   :  { %1370 = vmatprep.subr.bf16.mxu0 %v1473_v1 }
 0x20e   :  { %1371 = vmatpush3.bf16.msra.mxu0 %v1473_v1 }
 0x211   :  { %1373 = vmatmul.mubr.bf16.vlgmr.msra.gmra.mrb[12].mxu0 %v435_v32 }
 0x212   :  { %1376 = vmatprep.mubr.bf16.mxu0 %v436_v38 }
 0x219   :  { %1377 = vmatmul.mubr.bf16.gmra.mrb[20].mxu0 %v437_v2 }
 0x2cc   :  { %v1354_v14 = vpop.f32.mrb[16].mxu0 }
 0x2cd   :  { %v650_v15 = vpop.f32.mrb[17].mxu0 }
 0x2ce   :  { %v1355_v16 = vpop.f32.mrb[18].mxu0 }
 0x2cf   :  { %v653_v17 = vpop.f32.mrb[19].mxu0 }
 0x2e4   :  { %v1374_v20 = vpop.f32.mrb[12].mxu0 }
 0x2e5   :  { %v782_v21 = vadd.f32 %v1374_v20, %v779_v19  ;;  %v746_v22 = vpop.f32.mrb[13].mxu0 }
 0x2e6   :  { %v780_v23 = vadd.f32 %v779_v19, %v746_v22  ;;  %v1375_v24 = vpop.f32.mrb[14].mxu0  ;;  %v961_v22 = vsub.s32 4, %v1714_v11 }
 0x2e7   :  { %v783_v25 = vadd.f32 %v1375_v24, %v779_v19  ;;  %v749_v26 = vpop.f32.mrb[15].mxu0  ;;  %v789_v28 = vmax.f32 %v782_v21, 0.0 }
 0x2e8   :  { %v781_v27 = vadd.f32 %v779_v19, %v749_v26  ;;  %v787_v30 = vmax.f32 %v780_v23, 0.0  ;;  %v962_v23 = vrot.slane %v1720_v13, %v961_v22 }
 0x2e9   :  { %v790_v29 = vmax.f32 %v783_v25, 0.0 }
 0x2ea   :  { %v788_v31 = vmax.f32 %v781_v27, 0.0 }
 0x2eb   :  { %v795_v32 = vpack.c.bf16 %v790_v29, %v789_v28 }
 0x2ec   :  { %v794_v33 = vpack.c.bf16 %v788_v31, %v787_v30  ;;  %v1378_v0 = vpop.f32.mrb[20].mxu0 }
 0x2ed   :  { %v771_v34 = vadd.f32 %v1378_v0, %v1354_v14  ;;  %v762_v35 = vpop.f32.mrb[21].mxu0 }
 0x2ee   :  { %v763_v37 = vadd.f32 %v762_v35, %v650_v15  ;;  %v1379_v38 = vpop.f32.mrb[22].mxu0  ;;  %1396 = vmatprep.mubr.bf16.mxu1 %v794_v33 }
 0x2ef   :  { %v786_v39 = vadd.f32 %v779_v19, %v771_v34  ;;  %v765_v40 = vpop.f32.mrb[23].mxu0  ;;  %1397 = vmatmul.mubr.bf16.vlgmr.msra.gmra.mrb[12].mxu1 %v795_v32 }
 0x2f0   :  { %v784_v41 = vadd.f32 %v779_v19, %v763_v37  ;;  %v766_v42 = vadd.f32 %v765_v40, %v653_v17  ;;  %1405 = vmatpush3.bf16.msra.mxu1 %v1482_v12 }
 0x2f1   :  { %1406 = vmatprep.subr.bf16.mxu1 %v1483_v36  ;;  %v793_v45 = vmax.f32 %v786_v39, 0.0 }
 0x2f2   :  { %v785_v44 = vadd.f32 %v779_v19, %v766_v42  ;;  %v791_v46 = vmax.f32 %v784_v41, 0.0 }
 0x2f3   :  { %v797_v50 = vpack.c.bf16 %v793_v45, %v793_v45 }
 0x2f4   :  { %v792_v47 = vmax.f32 %v785_v44, 0.0  ;;  %1407 = vmatpush3.bf16.msra.mxu1 %v1483_v36 }
 0x2f5   :  { %1408 = vmatprep.subr.bf16.mxu1 %v1484_v43 }
 0x2f6   :  { %v796_v49 = vpack.c.bf16 %v792_v47, %v791_v46 }
 0x2f8   :  { %1400 = vmatprep.mubr.bf16.mxu1 %v796_v49  ;;  %1409 = vmatpush3.bf16.msra.mxu1 %v1484_v43 }
 0x2f9   :  { %1401 = vmatmul.mubr.bf16.gmra.mrb[16].mxu1 %v797_v50  ;;  %1410 = vmatprep.subr.bf16.mxu1 %v1485_v48 }
 0x2fc   :  { %1411 = vmatpush3.bf16.msra.mxu1 %v1485_v48 }
 0x2fd   :  { %1412 = vmatprep.subr.bf16.mxu1 %v1486_v51 }
 0x300   :  { %1413 = vmatpush3.bf16.msra.mxu1 %v1486_v51 }
 0x301   :  { %1414 = vmatprep.subr.bf16.mxu1 %v1487_v52 }
 0x304   :  { %1415 = vmatpush3.bf16.msra.mxu1 %v1487_v52 }
 0x305   :  { %1416 = vmatprep.subr.bf16.mxu1 %v1488_v53 }
 0x308   :  { %1417 = vmatpush3.bf16.msra.mxu1 %v1488_v53 }
 0x309   :  { %1418 = vmatprep.subr.bf16.mxu1 %v1489_v54 }
 0x30c   :  { %1419 = vmatpush3.bf16.msra.mxu1 %v1489_v54 }
 0x3c2   :  { %v1398_v57 = vpop.f32.mrb[12].mxu1 }
 0x3c3   :  { %v910_v58 = vadd.f32 %v1398_v57, %v818_v56  ;;  %v901_v59 = vpop.f32.mrb[13].mxu1 }
 0x3c4   :  { %v902_v60 = vadd.f32 %v901_v59, %v818_v56  ;;  %v1399_v61 = vpop.f32.mrb[14].mxu1 }
 0x3c5   :  { %v913_v62 = vadd.f32 %v1399_v61, %v818_v56  ;;  %v904_v63 = vpop.f32.mrb[15].mxu1  ;;  %v933_v2 = vmax.f32 %v910_v58, 0.0 }
 0x3c6   :  { %v905_v1 = vadd.f32 %v904_v63, %v818_v56  ;;  %v931_v4 = vmax.f32 %v902_v60, 0.0 }
 0x3c7   :  { %v934_v3 = vmax.f32 %v913_v62, 0.0 }
 0x3c8   :  { %v932_v5 = vmax.f32 %v905_v1, 0.0 }
 0x3c9   :  { %v939_v6 = vpack.c.bf16 %v934_v3, %v933_v2 }
 0x3ca   :  { %v938_v7 = vpack.c.bf16 %v932_v5, %v931_v4 }
 0x3cc   :  { %v1402_v8 = vpop.f32.mrb[16].mxu1  ;;  %1420 = vmatprep.mubr.bf16.mxu1 %v938_v7 }
 0x3cd   :  { %v926_v9 = vadd.f32 %v1402_v8, %v818_v56  ;;  %v917_v10 = vpop.f32.mrb[17].mxu1  ;;  %1421 = vmatmul.mubr.bf16.vlgmr.msra.gmra.mrb[20].mxu1 %v939_v6 }
 0x3ce   :  { %v918_v12 = vadd.f32 %v917_v10, %v818_v56  ;;  %v1403_v14 = vpop.f32.mrb[18].mxu1 }
 0x3cf   :  { %v920_v15 = vpop.f32.mrb[19].mxu1  ;;  %v937_v17 = vmax.f32 %v926_v9, 0.0 }
 0x3d0   :  { %v921_v16 = vadd.f32 %v920_v15, %v818_v56  ;;  %v935_v18 = vmax.f32 %v918_v12, 0.0 }
 0x3d1   :  { %v941_v21 = vpack.c.bf16 %v937_v17, %v937_v17 }
 0x3d2   :  { %v936_v19 = vmax.f32 %v921_v16, 0.0 }
 0x3d4   :  { %v940_v20 = vpack.c.bf16 %v936_v19, %v935_v18 }
 0x3d6   :  { %1424 = vmatprep.mubr.bf16.mxu1 %v940_v20 }
 0x3d7   :  { %1425 = vmatmul.mubr.bf16.gmra.mrb[24].mxu1 %v941_v21 }
 0x4a0   :  { %v1422_v24 = vpop.f32.mrb[20].mxu1 }
 0x4a1   :  { %v1054_v25 = vadd.f32 %v1422_v24, %v962_v23  ;;  %v1045_v26 = vpop.f32.mrb[21].mxu1 }
 0x4a2   :  { %v1046_v27 = vadd.f32 %v1045_v26, %v962_v23  ;;  %v1423_v28 = vpop.f32.mrb[22].mxu1 }
 0x4a3   :  { %v1191_v29 = vmul.f32 -1.442695, %v1054_v25  ;;  %v1057_v30 = vadd.f32 %v1423_v28, %v962_v23  ;;  %v1048_v31 = vpop.f32.mrb[23].mxu1 }
 0x4a4   :  { %v1189_v32 = vmul.f32 -1.442695, %v1046_v27  ;;  %v1049_v33 = vadd.f32 %v1048_v31, %v962_v23 }
 0x4a5   :  { %1490 = vpow2.f32 %v1191_v29  ;;  %v1192_v0 = vmul.f32 -1.442695, %v1057_v30 }
 0x4a6   :  { %1492 = vpow2.f32 %v1189_v32  ;;  %v1190_v34 = vmul.f32 -1.442695, %v1049_v33 }
 0x4a7   :  { %1494 = vpow2.f32 %v1192_v0 }
 0x4a8   :  { %1496 = vpow2.f32 %v1190_v34 }
 0x4aa   :  { %v1426_v35 = vpop.f32.mrb[24].mxu1 }
 0x4ab   :  { %v1070_v11 = vadd.f32 %v1426_v35, %v962_v23  ;;  %v1061_v36 = vpop.f32.mrb[25].mxu1 }
 0x4ac   :  { %v1062_v13 = vadd.f32 %v1061_v36, %v962_v23  ;;  %v1427_v37 = vpop.f32.mrb[26].mxu1 }
 0x4ad   :  { %v1195_v38 = vmul.f32 -1.442695, %v1070_v11  ;;  %v1064_v39 = vpop.f32.mrb[27].mxu1 }
 0x4ae   :  { %v1193_v40 = vmul.f32 -1.442695, %v1062_v13  ;;  %v1065_v41 = vadd.f32 %v1064_v39, %v962_v23 }
 0x4af   :  { %v1491_v42 = vpop.eup %1490  ;;  %1498 = vpow2.f32 %v1195_v38 }
 0x4b0   :  { %v1493_v43 = vpop.eup %1492  ;;  %v1098_v44 = vadd.f32 1.0, %v1491_v42  ;;  %1500 = vpow2.f32 %v1193_v40  ;;  %v1194_v49 = vmul.f32 -1.442695, %v1065_v41 }
 0x4b1   :  { %v1495_v45 = vpop.eup %1494  ;;  %v1096_v46 = vadd.f32 1.0, %v1493_v43 }
 0x4b2   :  { %v1497_v47 = vpop.eup %1496  ;;  %1502 = vrcp.f32 %v1098_v44  ;;  %v1099_v48 = vadd.f32 1.0, %v1495_v45 }
 0x4b3   :  { %1504 = vrcp.f32 %v1096_v46  ;;  %v1097_v50 = vadd.f32 1.0, %v1497_v47 }
 0x4b4   :  { %1506 = vrcp.f32 %v1099_v48 }
 0x4b5   :  { %1508 = vrcp.f32 %v1097_v50 }
 0x4b6   :  { %1510 = vpow2.f32 %v1194_v49 }
 0x4b9   :  { %v1499_v51 = vpop.eup %1498 }
 0x4ba   :  { %v1501_v52 = vpop.eup %1500  ;;  %v1102_v53 = vadd.f32 1.0, %v1499_v51 }
 0x4bb   :  { %v1100_v54 = vadd.f32 1.0, %v1501_v52 }
 0x4bc   :  { %v1503_v55 = vpop.eup %1502  ;;  %1512 = vrcp.f32 %v1102_v53 }
 0x4bd   :  { %v1505_v56 = vpop.eup %1504  ;;  %1119 = vst [vmem:[%s1775_s6 + $0x10] sm:$0xff] %v1503_v55  ;;  %1514 = vrcp.f32 %v1100_v54 }
 0x4be   :  { %v1507_v57 = vpop.eup %1506  ;;  %1117 = vst [vmem:[%s1775_s6] sm:$0xff] %v1505_v56 }
 0x4bf   :  { %v1509_v58 = vpop.eup %1508  ;;  %1120 = vst [vmem:[%s1775_s6 + $0x18] sm:$0xff] %v1507_v57 }
 0x4c0   :  { %v1511_v59 = vpop.eup %1510  ;;  %1118 = vst [vmem:[%s1775_s6 + $0x8] sm:$0xff] %v1509_v58 }
 0x4c1   :  { %v1101_v60 = vadd.f32 1.0, %v1511_v59 }
 0x4c3   :  { %1516 = vrcp.f32 %v1101_v60 }
 0x4c6   :  { %v1513_v61 = vpop.eup %1512 }
 0x4c7   :  { %v1515_v62 = vpop.eup %1514  ;;  %1123 = vst [vmem:[%s1775_s6 + $0x30] sm:$0xff] %v1513_v61 }
 0x4c8   :  { %1121 = vst [vmem:[%s1775_s6 + $0x20] sm:$0xff] %v1515_v62 }
 0x4cd   :  { %v1517_v63 = vpop.eup %1516 }
 0x4ce   :  { %1122 = vst [vmem:[%s1775_s6 + $0x28] sm:$0xff] %v1517_v63 }
 0x4cf   :  { %1132 = vsyncpa [#allocation3], 1 }

</bundles_post_ra>
